<compile_context>
chip_gen: v6e
topology: v6e:2x2x1
jax: 0.10.0
libtpu: 0.0.40
codegen_flags: <defaults>
</compile_context>

<pallas_src>
import functools
import math

import jax
import jax.numpy as jnp
import numpy as np
from jax.experimental import pallas as pl
from jax.experimental.pallas import tpu as pltpu


# ---------------------------------------------------------------------------
# helpers
# ---------------------------------------------------------------------------

def _pick_tile(dim, prefs):
    """Largest preferred tile that evenly divides `dim`, else the full dim."""
    for p in prefs:
        if dim >= p and dim % p == 0:
            return p
    return dim


def _vmem_limit_bytes(n_bytes):
    """Explicit scoped-VMEM limit derived from actual tile sizes (+ margin)."""
    return int(min(48 * 1024 * 1024, max(2 * n_bytes + (4 << 20), 8 << 20)))


# ---------------------------------------------------------------------------
# Tiled matmul kernel:  C = A @ B
# (B is already laid out (K, N): the wrapper passes pre-transposed weights,
#  so the kernel contracts the minor dims directly — no in-kernel transpose.)
# ---------------------------------------------------------------------------

def _matmul_kernel(a_ref, b_ref, o_ref, acc_ref):
    @pl.when(pl.program_id(2) == 0)
    def _():
        acc_ref[...] = jnp.zeros(acc_ref.shape, acc_ref.dtype)

    acc_ref[...] += jnp.dot(a_ref[...], b_ref[...],
                            preferred_element_type=jnp.float32)

    @pl.when(pl.program_id(2) == pl.num_programs(2) - 1)
    def _():
        o_ref[...] = acc_ref[...].astype(o_ref.dtype)


def pallas_matmul(a, b):
    M, K = a.shape
    K2, N = b.shape
    assert K == K2
    tm = _pick_tile(M, (256, 128, 64, 32, 16, 8))
    tn = _pick_tile(N, (256, 128))
    tk = _pick_tile(K, (512, 256, 128))

    itemsize = jnp.dtype(a.dtype).itemsize
    needed = 2 * (tm * tk + tk * tn + tm * tn) * itemsize + tm * tn * 4

    return pl.pallas_call(
        _matmul_kernel,
        out_shape=jax.ShapeDtypeStruct((M, N), a.dtype),
        grid_spec=pltpu.PrefetchScalarGridSpec(
            num_scalar_prefetch=0,
            grid=(M // tm, N // tn, K // tk),
            in_specs=[
                pl.BlockSpec((tm, tk), lambda i, j, k: (i, k)),
                pl.BlockSpec((tk, tn), lambda i, j, k: (k, j)),
            ],
            out_specs=pl.BlockSpec((tm, tn), lambda i, j, k: (i, j)),
            scratch_shapes=[pltpu.VMEM((tm, tn), jnp.float32)],
        ),
        compiler_params=pltpu.CompilerParams(
            dimension_semantics=("parallel", "parallel", "arbitrary"),
            vmem_limit_bytes=_vmem_limit_bytes(needed)),
    )(a, b)


# ---------------------------------------------------------------------------
# Flash-style attention kernel with the reference's (quirky) mask + scale.
# Grid: (batch, head, q_tile, kv_tile); kv is the innermost reduction axis.
# ---------------------------------------------------------------------------

def _flash_attn_kernel(q_ref, k_ref, v_ref, o_ref, m_scr, l_scr, acc_scr,
                       *, scale, tq, tkv):
    qi = pl.program_id(2)
    ki = pl.program_id(3)

    @pl.when(ki == 0)
    def _():
        m_scr[...] = jnp.full(m_scr.shape, -jnp.inf, dtype=m_scr.dtype)
        l_scr[...] = jnp.zeros(l_scr.shape, l_scr.dtype)
        acc_scr[...] = jnp.zeros(acc_scr.shape, acc_scr.dtype)

    # Fold 1/sqrt(d_model) into the (tq, hd) q tile instead of scaling the
    # (tq, tkv) score matrix (O(S*hd) vs O(S^2) VPU multiplies).
    q = q_ref[0, 0] * scale                          # (tq, hd)
    k = k_ref[0, 0]                                  # (tkv, hd)
    v = v_ref[0, 0]                                  # (tkv, hd)

    # q @ k^T by contracting the minor dims (no in-kernel transpose of k).
    s = jax.lax.dot_general(q, k, (((1,), (1,)), ((), ())),
                            preferred_element_type=jnp.float32)  # (tq, tkv)

    # Reproduce the reference exactly:
    #   mask = triu(ones, diagonal=1); scores.masked_fill(mask == 0, -1e9)
    # i.e. positions with col <= row are filled with -1e9.
    row = qi * tq + jax.lax.broadcasted_iota(jnp.int32, (tq, tkv), 0)
    col = ki * tkv + jax.lax.broadcasted_iota(jnp.int32, (tq, tkv), 1)
    s = jnp.where(col <= row, jnp.float32(-1e9), s)

    # Online softmax; m/l/acc live across the kv grid axis in VMEM scratch.
    m_prev = m_scr[...]
    m_new = jnp.maximum(m_prev, jnp.max(s, axis=-1, keepdims=True))
    alpha = jnp.exp(m_prev - m_new)
    p = jnp.exp(s - m_new)                                       # (tq, tkv) f32
    l_scr[...] = alpha * l_scr[...] + jnp.sum(p, axis=-1, keepdims=True)
    acc_scr[...] = alpha * acc_scr[...] + jax.lax.dot_general(
        p.astype(v.dtype), v, (((1,), (0,)), ((), ())),
        preferred_element_type=jnp.float32)
    m_scr[...] = m_new

    @pl.when(ki == pl.num_programs(3) - 1)
    def _():
        # Deferred normalization: divide the (tq, hd) result, not the
        # (tq, tkv) probability matrix.
        inv_l = pl.reciprocal(l_scr[...], approx=False)
        o_ref[0, 0] = (acc_scr[...] * inv_l).astype(o_ref.dtype)


def pallas_flash_attention(q, k, v, scale):
    B, H, S, hd = q.shape
    tq = _pick_tile(S, (128, 64, 32, 16, 8))
    tkv = _pick_tile(S, (256, 128, 64, 32, 16, 8))

    itemsize = jnp.dtype(q.dtype).itemsize
    needed = (2 * (tq * hd + 2 * tkv * hd + tq * hd) * itemsize
              + (2 * tq + tq * hd) * 4)

    kernel = functools.partial(_flash_attn_kernel, scale=scale, tq=tq, tkv=tkv)

    return pl.pallas_call(
        kernel,
        out_shape=jax.ShapeDtypeStruct((B, H, S, hd), q.dtype),
        grid_spec=pltpu.PrefetchScalarGridSpec(
            num_scalar_prefetch=0,
            grid=(B, H, S // tq, S // tkv),
            in_specs=[
                pl.BlockSpec((1, 1, tq, hd), lambda b, h, qi, ki: (b, h, qi, 0)),
                pl.BlockSpec((1, 1, tkv, hd), lambda b, h, qi, ki: (b, h, ki, 0)),
                pl.BlockSpec((1, 1, tkv, hd), lambda b, h, qi, ki: (b, h, ki, 0)),
            ],
            out_specs=pl.BlockSpec((1, 1, tq, hd),
                                   lambda b, h, qi, ki: (b, h, qi, 0)),
            scratch_shapes=[
                pltpu.VMEM((tq, 1), jnp.float32),   # running max   m
                pltpu.VMEM((tq, 1), jnp.float32),   # running denom l
                pltpu.VMEM((tq, hd), jnp.float32),  # running output acc
            ],
        ),
        compiler_params=pltpu.CompilerParams(
            dimension_semantics=("parallel", "parallel", "parallel", "arbitrary"),
            vmem_limit_bytes=_vmem_limit_bytes(needed)),
    )(q, k, v)


# ---------------------------------------------------------------------------
# Full forward pass
# ---------------------------------------------------------------------------

def causal_mha_pallas(x, wq, wk, wv, wo, n_heads):
    B, S, D = x.shape
    hd = D // n_heads

    # QKV projection as one wide GEMM over (B*S, D) @ (D, 3D); weights are
    # pre-transposed in the wrapper (layout plumbing, no in-kernel .T).
    x2d = x.reshape(B * S, D)
    w_qkv_t = jnp.concatenate([wq.T, wk.T, wv.T], axis=1)        # (D, 3D)
    qkv = pallas_matmul(x2d, w_qkv_t)                            # (B*S, 3D)

    q, k, v = jnp.split(qkv, 3, axis=-1)

    def to_heads(t):
        return t.reshape(B, S, n_heads, hd).transpose(0, 2, 1, 3)  # (B,H,S,hd)

    scale = 1.0 / math.sqrt(D)   # reference scales by sqrt(d_model), not head_dim
    ctx = pallas_flash_attention(to_heads(q), to_heads(k), to_heads(v), scale)

    ctx2d = ctx.transpose(0, 2, 1, 3).reshape(B * S, D)          # (B*S, D)
    out2d = pallas_matmul(ctx2d, wo.T)                           # (B*S, D)
    return out2d.reshape(B, S, D)


def causal_mha_reference(x, wq, wk, wv, wo, n_heads):
    """Pure-JAX reference mirroring the PyTorch module line by line."""
    B, S, D = x.shape
    hd = D // n_heads
    q = x @ wq.T
    k = x @ wk.T
    v = x @ wv.T
    q = q.reshape(B, S, n_heads, hd).transpose(0, 2, 1, 3)
    k = k.reshape(B, S, n_heads, hd).transpose(0, 2, 1, 3)
    v = v.reshape(B, S, n_heads, hd).transpose(0, 2, 1, 3)
    scores = jnp.einsum("bhqd,bhkd->bhqk", q, k) / jnp.sqrt(jnp.float32(D))
    mask = jnp.triu(jnp.ones((S, S), dtype=bool), k=1)[None, None]
    scores = jnp.where(~mask, -1e9, scores)   # masked_fill(mask == 0, -1e9)
    attn = jax.nn.softmax(scores, axis=-1)
    out = jnp.einsum("bhqk,bhkd->bhqd", attn, v)
    out = out.transpose(0, 2, 1, 3).reshape(B, S, D)
    return out @ wo.T


if __name__ == "__main__":
    B, S, D, H = 2, 8, 32, 4

    key = jax.random.PRNGKey(0)
    kx, kq, kk, kv, ko = jax.random.split(key, 5)
    x = jax.random.normal(kx, (B, S, D), dtype=jnp.float32)
    wq = jax.random.normal(kq, (D, D), dtype=jnp.float32) * 0.1
    wk = jax.random.normal(kk, (D, D), dtype=jnp.float32) * 0.1
    wv = jax.random.normal(kv, (D, D), dtype=jnp.float32) * 0.1
    wo = jax.random.normal(ko, (D, D), dtype=jnp.float32) * 0.1

    out = causal_mha_pallas(x, wq, wk, wv, wo, H)
    out = jax.block_until_ready(out)

    ref = causal_mha_reference(x, wq, wk, wv, wo, H)
    np.testing.assert_allclose(np.asarray(out), np.asarray(ref),
                               rtol=1e-4, atol=1e-4)

    print("KERNEL_OK")
</pallas_src>

<mosaic_0001>
module attributes {stable_mosaic.version = 11 : i64} {
  func.func @_matmul_kernel(%arg0: i32, %arg1: i32, %arg2: i32, %arg3: memref<16x32xf32, #tpu.memory_space<vmem>>, %arg4: memref<32x96xf32, #tpu.memory_space<vmem>>, %arg5: memref<16x96xf32, #tpu.memory_space<vmem>>, %arg6: memref<16x96xf32, #tpu.memory_space<vmem>>) attributes {dimension_semantics = [#tpu.dimension_semantics<parallel>, #tpu.dimension_semantics<parallel>, #tpu.dimension_semantics<arbitrary>], iteration_bounds = array<i64: 1, 1, 1>, scalar_prefetch = 0 : i64, scratch_operands = 1 : i64, tpu.core_type = #tpu.core_type<tc>, window_params = [{transform_indices = @transform_0, window_bounds = array<i64: 16, 32>}, {transform_indices = @transform_1, window_bounds = array<i64: 32, 96>}, {transform_indices = @transform_2, window_bounds = array<i64: 16, 96>}]} {
    %c0_i32 = arith.constant 0 : i32
    %0 = arith.cmpi eq, %arg2, %c0_i32 : i32
    %1 = arith.extui %0 : i1 to i32
    %c0_i32_0 = arith.constant 0 : i32
    %2 = arith.cmpi ne, %1, %c0_i32_0 : i32
    scf.if %2 {
      %cst_10 = arith.constant 0.000000e+00 : f32
      %12 = vector.broadcast %cst_10 : f32 to vector<16x96xf32>
      %c0_11 = arith.constant 0 : index
      %c0_12 = arith.constant 0 : index
      %13 = vector.load %arg6[%c0_11, %c0_12] : memref<16x96xf32, #tpu.memory_space<vmem>>, vector<16x96xf32>
      tpu.vector_store %arg6[%c0_11, %c0_12], %12 {strides = array<i32>} : memref<16x96xf32, #tpu.memory_space<vmem>>, vector<16x96xf32>,
    } else {
    }
    %c0 = arith.constant 0 : index
    %c0_1 = arith.constant 0 : index
    %3 = vector.load %arg6[%c0, %c0_1] : memref<16x96xf32, #tpu.memory_space<vmem>>, vector<16x96xf32>
    %c0_2 = arith.constant 0 : index
    %c0_3 = arith.constant 0 : index
    %4 = vector.load %arg3[%c0_2, %c0_3] : memref<16x32xf32, #tpu.memory_space<vmem>>, vector<16x32xf32>
    %c0_4 = arith.constant 0 : index
    %c0_5 = arith.constant 0 : index
    %5 = vector.load %arg4[%c0_4, %c0_5] : memref<32x96xf32, #tpu.memory_space<vmem>>, vector<32x96xf32>
    %cst = arith.constant dense<0.000000e+00> : vector<16x96xf32>
    %6 = tpu.matmul %4, %5, %cst {dimension_numbers = #tpu.dot_dimension_numbers<[1], [0], [0], [1], [0, 0, 1, 1], [], []>} : vector<16x32xf32>, vector<32x96xf32>, vector<16x96xf32> -> vector<16x96xf32>
    %7 = arith.addf %3, %6 : vector<16x96xf32>
    %c0_6 = arith.constant 0 : index
    %c0_7 = arith.constant 0 : index
    %8 = vector.load %arg6[%c0_6, %c0_7] : memref<16x96xf32, #tpu.memory_space<vmem>>, vector<16x96xf32>
    tpu.vector_store %arg6[%c0_6, %c0_7], %7 {strides = array<i32>} : memref<16x96xf32, #tpu.memory_space<vmem>>, vector<16x96xf32>,
    %c0_i32_8 = arith.constant 0 : i32
    %9 = arith.cmpi eq, %arg2, %c0_i32_8 : i32
    %10 = arith.extui %9 : i1 to i32
    %c0_i32_9 = arith.constant 0 : i32
    %11 = arith.cmpi ne, %10, %c0_i32_9 : i32
    scf.if %11 {
      %c0_10 = arith.constant 0 : index
      %c0_11 = arith.constant 0 : index
      %12 = vector.load %arg6[%c0_10, %c0_11] : memref<16x96xf32, #tpu.memory_space<vmem>>, vector<16x96xf32>
      %c0_12 = arith.constant 0 : index
      %c0_13 = arith.constant 0 : index
      %13 = vector.load %arg5[%c0_12, %c0_13] : memref<16x96xf32, #tpu.memory_space<vmem>>, vector<16x96xf32>
      tpu.vector_store %arg5[%c0_12, %c0_13], %12 {strides = array<i32>} : memref<16x96xf32, #tpu.memory_space<vmem>>, vector<16x96xf32>,
    } else {
    }
    return
  }
  func.func @transform_0(%arg0: i32, %arg1: i32, %arg2: i32) -> (i32, i32) {
    %c0_i32 = arith.constant 0 : i32
    return %arg0, %arg2 : i32, i32
  }
  func.func @transform_1(%arg0: i32, %arg1: i32, %arg2: i32) -> (i32, i32) {
    %c0_i32 = arith.constant 0 : i32
    return %arg2, %arg1 : i32, i32
  }
  func.func @transform_2(%arg0: i32, %arg1: i32, %arg2: i32) -> (i32, i32) {
    %c0_i32 = arith.constant 0 : i32
    return %arg0, %arg1 : i32, i32
  }
}

</mosaic_0001>

<bundles_post_ra>
// kernel: tpu_custom_call.1
= control target key start
LH: loop header
LB: loop body
LE: loop exit
PB: predicated region body
PF: predicated region fallthrough
CT: control target
= control target key end

     0   :  { %7 = vsyncpa [#allocation4], 0  ;;  %s305_s0 = inlined_call_operand.hbm [shape: f32[16,32], index: 0, kind: input, shape index: {}]   ;;  %s306_s1 = inlined_call_operand.hbm [shape: f32[32,96], index: 1, kind: input, shape index: {}]   ;;  %s307_s2 = inlined_call_operand.hbm [shape: f32[16,96], index: 2, kind: output, shape index: {}]  }
   0x1   :  { %8 = vsyncpa [#allocation7], 0 }
   0x2   :  { %9 = vsyncpa [#allocation5], 0  ;;  %s258_s9 = smov [#allocation3]  }
   0x3   :  { %s15_s10 = sshll.u32 %s258_s9, 4  ;;  %s16_s10 = int_to_ptr.vmem [resolvable:$true] %s15_s10 }
   0x4   :  { %s200_s11 = scalar_lea.vmem %s16_s10, 256  ;;  %p205_p1 = scmp.lt.s32.totalorder %s16_s10, %s16_s10 }
   0x5   :  { %p201_p0 = scmp.ne.s32.totalorder %s16_s10, %s200_s11  ;;  %p206_p2 = scmp.lt.s32.totalorder %s200_s11, %s200_s11 }
   0x7   :  { %p207_p3 = por %p206_p2, %p205_p1 }
   0x9   :  { %p208_p4 = pnand %p207_p3, %p201_p0 }
   0xb   :  { %211 = shalt.err (!%p208_p4)
}
   0xc   :  { %s259_s12 = smov 128   ;;  %s260_s13 = smov 8  }
   0xd   :  { %21 = dma.hbm_to_vmem [thread:$0]  %s305_s0, 256, %s16_s10, [#allocation4], %s259_s12, %s259_s12, %s260_s13  }
   0xe   :  { %s261_s16 = smov [#allocation6]  }
   0xf   :  { %s27_s17 = sshll.u32 %s261_s16, 4  ;;  %s28_s17 = int_to_ptr.vmem [resolvable:$true] %s27_s17 }
  0x10   :  { %s220_s18 = scalar_lea.vmem %s28_s17, 512  ;;  %p225_p6 = scmp.lt.s32.totalorder %s28_s17, %s28_s17 }
  0x11   :  { %p221_p5 = scmp.ne.s32.totalorder %s28_s17, %s220_s18  ;;  %p226_p7 = scmp.lt.s32.totalorder %s220_s18, %s220_s18 }
  0x13   :  { %p227_p8 = por %p226_p7, %p225_p6 }
  0x15   :  { %p228_p9 = pnand %p227_p8, %p221_p5 }
  0x17   :  { %231 = shalt.err (!%p228_p9)
}
  0x18   :  { %33 = dma.hbm_to_vmem [thread:$0]  %s306_s1, 512, %s28_s17, [#allocation7], %s259_s12, %s259_s12, %s260_s13  }
  0x19   :  { %252 = dma.done.wait [#allocation4], 256  }
  0x1a   :  { %253 = vsyncadd [#allocation4], 4294967040 }
  0x1b   :  { %254 = dma.done.wait [#allocation7], 512  }
  0x1c   :  { %255 = vsyncadd [#allocation7], 4294966784  ;;  %vm44_vm0 = vcmask 785408   ;;  %v262_v0 = vmov 0.0   ;;  %vm55_vm1 = vcmask 261120   ;;  %v54_v1 = vld [vmem:[#allocation6 + $0x18] sm:$0xff] }
  0x1d   :  { %46 = vst.msk [vmem:[#allocation2 + $0x8] sm:$0xff] %vm44_vm0, %v262_v0  ;;  %45 = vst.msk [vmem:[#allocation2] sm:$0xff] %vm44_vm0, %v262_v0  ;;  %v53_v2 = vld [vmem:[#allocation6 + $0x10] sm:$0xff]  ;;  %175 = vmatprep.subr.mxu0 %v54_v1  ;;  %v52_v4 = vld [vmem:[#allocation6 + $0x8] sm:$0xff]  ;;  %s263_s0 = smov [#allocation8]  }
  0x1e   :  { %v49_v3 = vld [vmem:[#allocation3] sm:$0xff]  ;;  %176 = vmatpush3.msra.mxu0 %v54_v1  ;;  %v51_v5 = vld [vmem:[#allocation6] sm:$0xff]  ;;  %v50_v6 = vld [vmem:[#allocation3 + $0x8] sm:$0xff]  ;;  %s154_s1 = sshll.u32 %s263_s0, 4  ;;  %s155_s1 = int_to_ptr.vmem [resolvable:$true] %s154_s1 }
  0x1f   :  { %183 = vmatprep.mubr.msk.f32.mxu0 %vm55_vm1, %v49_v3  ;;  %177 = vmatprep.subr.mxu0 %v53_v2  ;;  %s232_s21 = scalar_lea.vmem %s155_s1, 256  ;;  %p237_p11 = scmp.lt.s32.totalorder %s155_s1, %s155_s1 }
  0x20   :  { %178 = vmatpush3.msra.mxu0 %v53_v2  ;;  %p233_p10 = scmp.ne.s32.totalorder %s155_s1, %s232_s21  ;;  %p238_p12 = scmp.lt.s32.totalorder %s232_s21, %s232_s21 }
  0x21   :  { %179 = vmatprep.subr.mxu0 %v52_v4 }
  0x22   :  { %180 = vmatpush3.msra.mxu0 %v52_v4  ;;  %p239_p13 = por %p238_p12, %p237_p11 }
  0x23   :  { %181 = vmatprep.subr.mxu0 %v51_v5 }
  0x24   :  { %182 = vmatpush3.msra.mxu0 %v51_v5  ;;  %v48_v7 = vld [vmem:[#allocation2 + $0x8] sm:$0xff]  ;;  %v47_v9 = vld [vmem:[#allocation2] sm:$0xff]  ;;  %p240_p0 = pnand %p239_p13, %p233_p10 }
  0x25   :  { %184 = vmatmul.mubr.msk.f32.vlgmr.msra.gmra.mxu0 %vm55_vm1, %v50_v6 }
  0xe5   :  { %v185_v8 = vpop.f32.mrf.mxu0 }
  0xe6   :  { %v138_v10 = vadd.f32 %v185_v8, %v48_v7 }
  0xe7   :  { %v128_v11 = vpop.f32.mrf.mxu0 }
  0xe8   :  { %141 = vst.msk [vmem:[#allocation2 + $0x8] sm:$0xff] %vm44_vm0, %v138_v10  ;;  %v137_v12 = vadd.f32 %v128_v11, %v47_v9 }
  0xea   :  { %140 = vst.msk [vmem:[#allocation2] sm:$0xff] %vm44_vm0, %v137_v12 }
  0xef   :  { %v146_v13 = vld [vmem:[#allocation2 + $0x8] sm:$0xff] }
  0xf0   :  { %148 = vst.msk [vmem:[#allocation8 + $0x8] sm:$0xff] %vm44_vm0, %v146_v13 }
  0xf1   :  { %v145_v14 = vld [vmem:[#allocation2] sm:$0xff] }
  0xf2   :  { %147 = vst.msk [vmem:[#allocation8] sm:$0xff] %vm44_vm0, %v145_v14 }
  0xf3   :  { %243 = shalt.err (!%p240_p0)
}
  0xf4   :  { %160 = dma.vmem_to_hbm [thread:$0]  %s155_s1, 256, %s307_s2, [#allocation5], %s259_s12, %s259_s12, %s260_s13  }
  0xf5   :  { %256 = dma.done.wait [#allocation5], 256  }
  0xf6   :  { %257 = vsyncadd [#allocation5], 4294967040 }
  0xf7   :  { %164 = vsyncpa [#allocation4], 1 }
  0xf8   :  { %165 = vsyncpa [#allocation7], 1 }
  0xf9   :  { %166 = vsyncpa [#allocation5], 1 }

</bundles_post_ra>
